<compile_context>
chip_gen: v6e
topology: v6e:2x2x1
jax: 0.10.0
libtpu: 0.0.40
codegen_flags: <defaults>
</compile_context>

<pallas_src>
import math

import jax
import jax.numpy as jnp
from jax.experimental import pallas as pl
from jax.experimental.pallas import tpu as pltpu


def _pick_tile(dim, candidates):
    """Largest candidate tile that evenly divides `dim`, else the full dim."""
    for c in candidates:
        if dim >= c and dim % c == 0:
            return c
    return dim


# --------------------------- tiled linear kernel ---------------------------
# Computes x @ w.T with w kept in the PyTorch Linear (out, in) layout.

def _linear_kernel(x_ref, w_ref, o_ref, acc_ref):
    @pl.when(pl.program_id(2) == 0)
    def _():
        acc_ref[...] = jnp.zeros_like(acc_ref)

    acc_ref[...] += jax.lax.dot_general(
        x_ref[...], w_ref[...],
        dimension_numbers=(((1,), (1,)), ((), ())),   # contract K with K
        preferred_element_type=jnp.float32)

    @pl.when(pl.program_id(2) == pl.num_programs(2) - 1)
    def _():
        o_ref[...] = acc_ref[...].astype(o_ref.dtype)


def pallas_linear(x, w, out_dtype=None):
    """x: (M, K); w: (N, K) (PyTorch Linear layout). Returns x @ w.T: (M, N)."""
    M, K = x.shape
    N, K2 = w.shape
    assert K == K2, (x.shape, w.shape)
    out_dtype = x.dtype if out_dtype is None else out_dtype

    tm = _pick_tile(M, (256, 128, 64, 32, 16, 8))
    tn = _pick_tile(N, (256, 128))
    tk = _pick_tile(K, (512, 256, 128))

    return pl.pallas_call(
        _linear_kernel,
        out_shape=jax.ShapeDtypeStruct((M, N), out_dtype),
        grid=(M // tm, N // tn, K // tk),
        in_specs=[
            pl.BlockSpec((tm, tk), lambda i, j, k: (i, k)),
            pl.BlockSpec((tn, tk), lambda i, j, k: (j, k)),
        ],
        out_specs=pl.BlockSpec((tm, tn), lambda i, j, k: (i, j)),
        scratch_shapes=[pltpu.VMEM((tm, tn), jnp.float32)],
        compiler_params=pltpu.CompilerParams(
            dimension_semantics=("parallel", "parallel", "arbitrary"),
            vmem_limit_bytes=64 * 1024 * 1024),
    )(x, w)


# -------------------- flash-style attention core kernel --------------------

def _make_flash_attn_kernel(inv_norm_factor, approx_recip):
    neg_min = float(jnp.finfo(jnp.float32).min)

    def kernel(q_ref, k_ref, v_ref, alibi_ref, mask_ref, o_ref,
               m_sc, l_sc, acc_sc):
        # q: (tq, D)   k/v: (tk, D)   alibi: (tq, tk) f32   mask: (tq, tk) i8
        ki = pl.program_id(3)

        @pl.when(ki == 0)
        def _():
            m_sc[...] = jnp.full_like(m_sc, -jnp.inf)
            l_sc[...] = jnp.zeros_like(l_sc)
            acc_sc[...] = jnp.zeros_like(acc_sc)

        q = q_ref[...] * inv_norm_factor          # scale S*D, not S*S
        # scores = alibi + (q/sqrt(d)) @ k^T  (contraction over D; K stays in
        # its natural (tk, D) layout, no pre-transpose).  beta == 1.0.
        s = jax.lax.dot_general(
            q, k_ref[...], dimension_numbers=(((1,), (1,)), ((), ())),
            preferred_element_type=jnp.float32)
        s = s + alibi_ref[...].astype(jnp.float32)
        s = jnp.where(mask_ref[...] != 0, neg_min, s)

        # online softmax (float32, matches F.softmax(..., dtype=float32))
        m_prev = m_sc[...]
        m_new = jnp.maximum(m_prev, jnp.max(s, axis=-1, keepdims=True))
        alpha = jnp.exp(m_prev - m_new)
        p = jnp.exp(s - m_new)
        l_sc[...] = alpha * l_sc[...] + jnp.sum(p, axis=-1, keepdims=True)
        acc_sc[...] = alpha * acc_sc[...] + jnp.dot(
            p.astype(v_ref.dtype), v_ref[...],
            preferred_element_type=jnp.float32)
        m_sc[...] = m_new

        @pl.when(ki == pl.num_programs(3) - 1)
        def _():
            o_ref[...] = (acc_sc[...]
                          * pl.reciprocal(l_sc[...], approx=approx_recip)
                          ).astype(o_ref.dtype)

    return kernel


def pallas_attention(proj_qkv, alibi4, mask_i8, num_heads, head_dim,
                     inv_norm_factor, out_dtype, approx_recip):
    """proj_qkv: (B, S, 3*H*D) packed W_pack output.
    alibi4: (B, H, S, S) float32.  mask_i8: (B, Hm, S, S) int8, Hm in {1, H}.
    Returns the attention output already laid out as (B, S, H*D)."""
    B, S, threeh = proj_qkv.shape
    H, D = num_heads, head_dim
    hidden = H * D
    assert threeh == 3 * hidden
    Hm = mask_i8.shape[1]

    tq = _pick_tile(S, (256, 128))
    tk = _pick_tile(S, (512, 256, 128))
    grid = (B, H, S // tq, S // tk)

    if Hm == H:
        mask_map = lambda b, h, qi, ki: (b, h, qi, ki)
    else:                                   # broadcast over heads, no copy
        mask_map = lambda b, h, qi, ki: (b, 0, qi, ki)

    kernel = _make_flash_attn_kernel(inv_norm_factor, approx_recip)

    return pl.pallas_call(
        kernel,
        out_shape=jax.ShapeDtypeStruct((B, S, hidden), out_dtype),
        grid=grid,
        in_specs=[
            # q / k / v are head-sized (D-wide) column blocks of the packed
            # projection: q -> block h, k -> block H + h, v -> block 2H + h.
            pl.BlockSpec((None, tq, D), lambda b, h, qi, ki: (b, qi, h)),
            pl.BlockSpec((None, tk, D), lambda b, h, qi, ki: (b, ki, H + h)),
            pl.BlockSpec((None, tk, D), lambda b, h, qi, ki: (b, ki, 2 * H + h)),
            pl.BlockSpec((None, None, tq, tk), lambda b, h, qi, ki: (b, h, qi, ki)),
            pl.BlockSpec((None, None, tq, tk), mask_map),
        ],
        # Output is written directly in (B, S, hidden) layout (head h -> block
        # h of the last dim), so no post-attention transpose is needed.  The
        # block index is constant across the kv axis (accumulator pattern).
        out_specs=pl.BlockSpec((None, tq, D), lambda b, h, qi, ki: (b, qi, h)),
        scratch_shapes=[
            pltpu.VMEM((tq, 1), jnp.float32),   # running max
            pltpu.VMEM((tq, 1), jnp.float32),   # running denom
            pltpu.VMEM((tq, D), jnp.float32),   # output accumulator
        ],
        compiler_params=pltpu.CompilerParams(
            dimension_semantics=("parallel", "parallel", "parallel",
                                 "arbitrary"),
            vmem_limit_bytes=64 * 1024 * 1024),
    )(proj_qkv, proj_qkv, proj_qkv, alibi4, mask_i8)


# ----------------------------- module wrapper ------------------------------

def baichuan_attention_forward(hidden_states, alibi, attention_mask,
                               w_pack, w_o, num_heads,
                               compute_dtype=jnp.bfloat16):
    """Reproduces BaichuanAttention.forward (no past_key_value / cache).

    hidden_states: (bsz, q_len, hidden) float32
    alibi:         (bsz*num_heads, q_len, q_len) float32
    attention_mask:(bsz, 1 or num_heads, q_len, q_len) bool (True = masked)
    w_pack:        (3*hidden, hidden)  -- PyTorch Linear weight layout
    w_o:           (hidden, hidden)    -- PyTorch Linear weight layout
    """
    bsz, q_len, hidden = hidden_states.shape
    head_dim = hidden // num_heads
    assert head_dim * num_heads == hidden
    # The fused "q/k/v straight from the packed projection" indexing needs
    # lane-aligned heads (true for real Baichuan: head_dim == 128).
    # TODO(synk): add a head-major-transpose fallback for head_dim % 128 != 0.
    assert head_dim % 128 == 0, "head_dim must be a multiple of 128"
    assert attention_mask.ndim == 4 and attention_mask.shape[0] == bsz
    inv_norm_factor = 1.0 / math.sqrt(head_dim)

    cd = compute_dtype

    # --- packed QKV projection: one tiled matmul, weight stays (out, in) ---
    x2d = hidden_states.reshape(bsz * q_len, hidden).astype(cd)
    proj = pallas_linear(x2d, w_pack.astype(cd), out_dtype=cd)
    proj3 = proj.reshape(bsz, q_len, 3 * hidden)            # free reshape

    # --- attention core: reads q/k/v directly out of proj3 ---
    alibi4 = alibi.reshape(bsz, num_heads, q_len, q_len).astype(jnp.float32)
    mask_i8 = attention_mask.astype(jnp.int8)               # 1 byte / element

    attn = pallas_attention(
        proj3, alibi4, mask_i8, num_heads, head_dim, inv_norm_factor,
        out_dtype=cd,
        approx_recip=(jnp.dtype(cd) == jnp.dtype(jnp.bfloat16)),
    )                                                       # (B, S, hidden)

    # --- o_proj ---
    out = pallas_linear(attn.reshape(bsz * q_len, hidden), w_o.astype(cd),
                        out_dtype=hidden_states.dtype)
    return out.reshape(bsz, q_len, hidden)

    # TODO(synk): past_key_value / use_cache and output_attentions paths are
    # plain bookkeeping and omitted; only the core forward path is kernelized.


# ----------------------------- pure-JAX reference ---------------------------

def baichuan_attention_reference(hidden_states, alibi, attention_mask,
                                 w_pack, w_o, num_heads):
    bsz, q_len, hidden = hidden_states.shape
    head_dim = hidden // num_heads
    inv_norm_factor = 1.0 / math.sqrt(head_dim)

    proj = hidden_states @ w_pack.T
    proj = proj.reshape(bsz, q_len, 3, hidden)
    q = proj[:, :, 0, :].reshape(bsz, q_len, num_heads, head_dim)
    k = proj[:, :, 1, :].reshape(bsz, q_len, num_heads, head_dim)
    v = proj[:, :, 2, :].reshape(bsz, q_len, num_heads, head_dim)
    q = q.transpose(0, 2, 1, 3).reshape(bsz * num_heads, q_len, head_dim)
    k = k.transpose(0, 2, 3, 1).reshape(bsz * num_heads, head_dim, q_len)
    v = v.transpose(0, 2, 1, 3).reshape(bsz * num_heads, q_len, head_dim)

    scores = alibi + inv_norm_factor * jnp.einsum("bqd,bdk->bqk", q, k)
    scores = scores.reshape(bsz, num_heads, q_len, q_len)
    scores = jnp.where(attention_mask, jnp.finfo(jnp.float32).min, scores)
    probs = jax.nn.softmax(scores.astype(jnp.float32), axis=-1)
    probs = probs.reshape(bsz * num_heads, q_len, q_len)
    out = jnp.einsum("bqk,bkd->bqd", probs, v)
    out = out.reshape(bsz, num_heads, q_len, head_dim)
    out = out.transpose(0, 2, 1, 3).reshape(bsz, q_len, hidden)
    return out @ w_o.T


# ----------------------------------- main -----------------------------------

if __name__ == "__main__":
    # Small config; head_dim=128 matches real Baichuan and keeps heads
    # lane-aligned for the fused QKV indexing.
    bsz, q_len = 2, 8
    num_heads = 2
    head_dim = 128
    hidden_size = num_heads * head_dim        # 256

    key = jax.random.PRNGKey(0)
    k_x, k_wp, k_wo, k_alibi = jax.random.split(key, 4)

    hidden_states = jax.random.normal(k_x, (bsz, q_len, hidden_size),
                                      dtype=jnp.float32)
    # PyTorch Linear weight layout: (out_features, in_features).
    w_pack = (jax.random.normal(k_wp, (3 * hidden_size, hidden_size),
                                dtype=jnp.float32)
              * (1.0 / math.sqrt(hidden_size)))
    w_o = (jax.random.normal(k_wo, (hidden_size, hidden_size),
                             dtype=jnp.float32)
           * (1.0 / math.sqrt(hidden_size)))

    # ALiBi bias tensor, shape (bsz*num_heads, q_len, q_len).
    alibi = 0.1 * jax.random.normal(
        k_alibi, (bsz * num_heads, q_len, q_len), dtype=jnp.float32)

    # Causal boolean mask (True = masked), shared across heads (no broadcast
    # materialization needed — the kernel's mask index_map handles it).
    causal = jnp.triu(jnp.ones((q_len, q_len), dtype=bool), k=1)
    attention_mask = jnp.broadcast_to(
        causal[None, None, :, :], (bsz, 1, q_len, q_len))

    ref = baichuan_attention_reference(
        hidden_states, alibi, attention_mask, w_pack, w_o, num_heads)
    ref = jax.block_until_ready(ref)

    # Float32 compute path: tight correctness check.
    out_f32 = baichuan_attention_forward(
        hidden_states, alibi, attention_mask, w_pack, w_o, num_heads,
        compute_dtype=jnp.float32)
    out_f32 = jax.block_until_ready(out_f32)
    assert out_f32.shape == (bsz, q_len, hidden_size)
    assert jnp.allclose(out_f32, ref, atol=2e-3, rtol=2e-3), \
        "f32 path mismatch vs reference"

    # bfloat16 compute path (production config): looser tolerance.
    out_bf16 = baichuan_attention_forward(
        hidden_states, alibi, attention_mask, w_pack, w_o, num_heads,
        compute_dtype=jnp.bfloat16)
    out_bf16 = jax.block_until_ready(out_bf16)
    assert out_bf16.shape == (bsz, q_len, hidden_size)
    assert jnp.allclose(out_bf16, ref, atol=0.15, rtol=0.05), \
        "bf16 path mismatch vs reference"

    print("KERNEL_OK")
</pallas_src>

<mosaic_0001>
module attributes {stable_mosaic.version = 11 : i64} {
  func.func @_linear_kernel(%arg0: i32, %arg1: i32, %arg2: i32, %arg3: memref<16x256xf32, #tpu.memory_space<vmem>>, %arg4: memref<256x256xf32, #tpu.memory_space<vmem>>, %arg5: memref<16x256xf32, #tpu.memory_space<vmem>>, %arg6: memref<16x256xf32, #tpu.memory_space<vmem>>) attributes {dimension_semantics = [#tpu.dimension_semantics<parallel>, #tpu.dimension_semantics<parallel>, #tpu.dimension_semantics<arbitrary>], iteration_bounds = array<i64: 1, 3, 1>, scalar_prefetch = 0 : i64, scratch_operands = 1 : i64, tpu.core_type = #tpu.core_type<tc>, window_params = [{transform_indices = @transform_0, window_bounds = array<i64: 16, 256>}, {transform_indices = @transform_1, window_bounds = array<i64: 256, 256>}, {transform_indices = @transform_2, window_bounds = array<i64: 16, 256>}]} {
    %c0_i32 = arith.constant 0 : i32
    %0 = arith.cmpi eq, %arg2, %c0_i32 : i32
    %1 = arith.extui %0 : i1 to i32
    %c0_i32_0 = arith.constant 0 : i32
    %2 = arith.cmpi ne, %1, %c0_i32_0 : i32
    scf.if %2 {
      %cst_10 = arith.constant 0.000000e+00 : f32
      %12 = vector.broadcast %cst_10 : f32 to vector<16x256xf32>
      %c0_11 = arith.constant 0 : index
      %c0_12 = arith.constant 0 : index
      %13 = vector.load %arg6[%c0_11, %c0_12] : memref<16x256xf32, #tpu.memory_space<vmem>>, vector<16x256xf32>
      tpu.vector_store %arg6[%c0_11, %c0_12], %12 {strides = array<i32>} : memref<16x256xf32, #tpu.memory_space<vmem>>, vector<16x256xf32>,
    } else {
    }
    %c0 = arith.constant 0 : index
    %c0_1 = arith.constant 0 : index
    %3 = vector.load %arg6[%c0, %c0_1] : memref<16x256xf32, #tpu.memory_space<vmem>>, vector<16x256xf32>
    %c0_2 = arith.constant 0 : index
    %c0_3 = arith.constant 0 : index
    %4 = vector.load %arg3[%c0_2, %c0_3] : memref<16x256xf32, #tpu.memory_space<vmem>>, vector<16x256xf32>
    %c0_4 = arith.constant 0 : index
    %c0_5 = arith.constant 0 : index
    %5 = vector.load %arg4[%c0_4, %c0_5] : memref<256x256xf32, #tpu.memory_space<vmem>>, vector<256x256xf32>
    %cst = arith.constant dense<0.000000e+00> : vector<16x256xf32>
    %6 = tpu.matmul %4, %5, %cst {dimension_numbers = #tpu.dot_dimension_numbers<[1], [1], [0], [0], [0, 0, 1, 0], [], []>} : vector<16x256xf32>, vector<256x256xf32>, vector<16x256xf32> -> vector<16x256xf32>
    %7 = arith.addf %3, %6 : vector<16x256xf32>
    %c0_6 = arith.constant 0 : index
    %c0_7 = arith.constant 0 : index
    %8 = vector.load %arg6[%c0_6, %c0_7] : memref<16x256xf32, #tpu.memory_space<vmem>>, vector<16x256xf32>
    tpu.vector_store %arg6[%c0_6, %c0_7], %7 {strides = array<i32>} : memref<16x256xf32, #tpu.memory_space<vmem>>, vector<16x256xf32>,
    %c0_i32_8 = arith.constant 0 : i32
    %9 = arith.cmpi eq, %arg2, %c0_i32_8 : i32
    %10 = arith.extui %9 : i1 to i32
    %c0_i32_9 = arith.constant 0 : i32
    %11 = arith.cmpi ne, %10, %c0_i32_9 : i32
    scf.if %11 {
      %c0_10 = arith.constant 0 : index
      %c0_11 = arith.constant 0 : index
      %12 = vector.load %arg6[%c0_10, %c0_11] : memref<16x256xf32, #tpu.memory_space<vmem>>, vector<16x256xf32>
      %c0_12 = arith.constant 0 : index
      %c0_13 = arith.constant 0 : index
      %13 = vector.load %arg5[%c0_12, %c0_13] : memref<16x256xf32, #tpu.memory_space<vmem>>, vector<16x256xf32>
      tpu.vector_store %arg5[%c0_12, %c0_13], %12 {strides = array<i32>} : memref<16x256xf32, #tpu.memory_space<vmem>>, vector<16x256xf32>,
    } else {
    }
    return
  }
  func.func @transform_0(%arg0: i32, %arg1: i32, %arg2: i32) -> (i32, i32) {
    %c0_i32 = arith.constant 0 : i32
    return %arg0, %arg2 : i32, i32
  }
  func.func @transform_1(%arg0: i32, %arg1: i32, %arg2: i32) -> (i32, i32) {
    %c0_i32 = arith.constant 0 : i32
    return %arg1, %arg2 : i32, i32
  }
  func.func @transform_2(%arg0: i32, %arg1: i32, %arg2: i32) -> (i32, i32) {
    %c0_i32 = arith.constant 0 : i32
    return %arg0, %arg1 : i32, i32
  }
}

</mosaic_0001>

<bundles_post_ra>
// kernel: tpu_custom_call.1
= control target key start
LH: loop header
LB: loop body
LE: loop exit
PB: predicated region body
PF: predicated region fallthrough
CT: control target
= control target key end

     0   :  { %7 = vsyncpa [#allocation4], 0  ;;  %s1100_s0 = inlined_call_operand.hbm [shape: f32[16,256], index: 0, kind: input, shape index: {}]   ;;  %s1101_s1 = inlined_call_operand.hbm [shape: f32[768,256], index: 1, kind: input, shape index: {}]   ;;  %s1102_s2 = inlined_call_operand.hbm [shape: f32[16,768], index: 2, kind: output, shape index: {}]  }
   0x1   :  { %8 = vsyncpa [#allocation7], 0 }
   0x2   :  { %10 = vsyncpa [#allocation7 + $0x1], 0 }
   0x3   :  { %11 = vsyncpa [#allocation5], 0 }
   0x4   :  { %13 = vsyncpa [#allocation5 + $0x1], 0  ;;  %s848_s9 = smov 0   ;;  %s850_s10 = smov 0  }
   0x5   :  { %s852_s11 = smov 0   ;;  %s854_s12 = smov 0  }
   0x6   :  { %s856_s13 = smov 0   ;;  %s858_s14 = smov 0  }
   0x7 LB: > { %s522_s15 = sadd.s32 4294967295, %s823_s14   ;;  %s523_s16 = sadd.s32 4294967294, %s823_s14   ;;  %s823_s14 = sphi %s858_s14, %s19_s14   ;;  %s819_s13 = sphi %s856_s13, %s1121_s13   ;;  %s815_s12 = sphi %s854_s12, %s1120_s12   ;;  %s811_s11 = sphi %s852_s11, %s1119_s11   ;;  %s807_s10 = sphi %s850_s10, %s1118_s10   ;;  %s803_s9 = sphi %s848_s9, %s1117_s9  }
   0x8   : > { %p88_p0 = scmp.ne.s32.totalorder %s807_s10, %s803_s9  ;;  %p882_p1 = scmp.eq.s32.totalorder %s522_s15, 0 }
   0x9   : > { %p886_p2 = scmp.eq.s32.totalorder %s522_s15, 2  ;;  %p120_p3 = scmp.eq.s32.totalorder %s523_s16, 2 }
   0xa   : > { %p892_p4 = por %p882_p1, %p88_p0  ;;  %p524_p5 = scmp.ge.s32.totalorder %s823_s14, 1 }
   0xb   : > { %p897_p6 = por %p120_p3, %p88_p0  ;;  %p127_p7 = scmp.lt.s32.totalorder %s823_s14, 4 }
   0xc   : > { %s825_s22 = smov [#allocation3]   ;;  %s34_s25 = sadd.s32 1, %s819_s13 }
   0xd   : > { %s1108_s20 = scalar_select %p897_p6, 1, 0 }
   0xe   : > { %p902_p8 = pnand %p524_p5, %p127_p7  ;;  %s145_s23 = sshll.u32 %s825_s22, 4  ;;  %s146_s23 = int_to_ptr.vmem [resolvable:$true] %s145_s23 }
   0xf   : > { %s696_s26 = scalar_lea.vmem %s146_s23, 512  ;;  %p704_p3 = scmp.lt.s32.totalorder %s146_s23, %s146_s23 }
  0x10   : > { %p615_p9 = pneg %p902_p8  ;;  %p697_p12 = scmp.ne.s32.totalorder %s146_s23, %s696_s26 }
  0x11   : > { %p705_p5 = scmp.lt.s32.totalorder %s696_s26, %s696_s26 }
  0x12   : > { %p910_p10 = pnand %p615_p9, %p882_p1 }
  0x13   : > { %p706_p7 = por %p705_p5, %p704_p3 }
  0x14   : > { %p687_p11 = pneg %p910_p10 }
  0x16   : > { %p699_p13 = pnand %p697_p12, %p687_p11 }
  0x18   : > { %p700_p0 = pneg %p699_p13 }
  0x1a   : > { %p707_p6 = pnand %p706_p7, %p700_p0 }
  0x1c   : > { %710 = shalt.err (!%p707_p6)
}
  0x1d   : > { %s1103_s27 = smov 256   ;;  %s827_s28 = smov 16  }
  0x1e   : > { %618 = dma.hbm_to_vmem [thread:$0]  (!%p910_p10), %s1100_s0, 512, %s146_s23, [#allocation4], %s1103_s27, %s1103_s27, %s827_s28  }
  0x1f   : > { %p36_p6 = scmp.ge.s32.totalorder %s34_s25, 3  ;;  %s75_s3 = sadd.s32 1, %s811_s11 }
  0x20   : > { %p82_p9 = scmp.ne.s32.totalorder %s811_s11, %s807_s10  ;;  %p83_p11 = scmp.eq.s32.totalorder %s823_s14, 0 }
  0x21   : > { %s1123_s25 = smov (%p36_p6, %s34_s25), 0  ;;  %p628_p0 = scmp.lt.s32.totalorder %s823_s14, 3 }
  0x22   : > { %p931_p12 = por %p83_p11, %p82_p9  ;;  %p937_p13 = por %p886_p2, %p82_p9 }
  0x23   : > { %s70_s6 = ssub.s32 %s819_s13, %s1123_s25  ;;  %s159_s7 = sand.u32 1, %s811_s11  }
  0x24   : > { %s1112_s5 = scalar_select %p937_p13, 1, 0 }
  0x25   : > { %p73_p10 = scmp.eq.s32.totalorder %s70_s6, 0  ;;  %s527_s8 = sshll.u32 %s159_s7, 9 }
  0x26   : > { %s541_s16 = sshll.u32 %s819_s13, 13  ;;  %s163_s26 = scalar_lea.vmem [#allocation6], %s527_s8 }
  0x27   : > { %s946_s15 = scalar_select %p73_p10, %s811_s11, %s75_s3  }
  0x28   : > { %s172_s24 = scalar_lea.hbm %s1101_s1, %s541_s16  ;;  %s173_s29 = sshll.u32 %s163_s26, 4  ;;  %s174_s29 = int_to_ptr.vmem [resolvable:$true] %s173_s29 }
  0x29   : > { %p954_p2 = pnand %p628_p0, %p931_p12  ;;  %s160_s30 = scalar_lea.sflag [#allocation7], %s159_s7 }
  0x2a   : > { %s724_s6 = scalar_lea.vmem %s174_s29, 8192  ;;  %s828_s3 = smov [#allocation6]  }
  0x2b   : > { %p713_p3 = pneg %p954_p2  ;;  %p725_p5 = scmp.ne.s32.totalorder %s174_s29, %s724_s6 }
  0x2c   : > { %s729_s27 = sshll.u32 %s828_s3, 4  ;;  %s730_s27 = int_to_ptr.vmem [resolvable:$false] %s729_s27 }
  0x2d   : > { %p727_p7 = pnand %p725_p5, %p713_p3  ;;  %s731_s16 = scalar_lea.vmem %s730_s27, 16384 }
  0x2e   : > { %p732_p9 = scmp.lt.s32.totalorder %s174_s29, %s730_s27  ;;  %p733_p11 = scmp.lt.s32.totalorder %s731_s16, %s724_s6 }
  0x2f   : > { %p728_p6 = pneg %p727_p7 }
  0x30   : > { %p734_p10 = por %p733_p11, %p732_p9 }
  0x32   : > { %p735_p13 = pnand %p734_p10, %p728_p6 }
  0x34   : > { %738 = shalt.err (!%p735_p13)
}
  0x35   : > { %s1114_s4 = smov 256   ;;  %185 = sbr.rel (%p902_p8) target bundleno = 402 (0x192), region = 28 }
  0x36   : > { %622 = dma.hbm_to_vmem [thread:$0]  (!%p954_p2), %s172_s24, 8192, %s174_s29, %s160_s30, %s1114_s4, %s1114_s4, %s827_s28  }
  0x3a   : > { %790 = dma.done.wait (%p882_p1), [#allocation4], 512  }
  0x3b   : > { %792 = vsyncadd (%p882_p1), [#allocation4], 4294966784  ;;  %s972_s27 = sand.u32 1, %s807_s10  }
  0x3c   : > { %s533_s7 = sshll.u32 %s972_s27, 9  ;;  %s192_s8 = scalar_lea.sflag [#allocation7], %s972_s27 }
  0x3d   : > { %s976_s22 = scalar_lea.vmem [#allocation6], %s533_s7 }
  0x3e   : > { %794 = dma.done.wait (%p892_p4), %s192_s8, 8192  }
  0x3f   : > { %796 = vsyncadd (%p892_p4), %s192_s8, 4294959104  ;;  %v269_v0 = vld [vmem:[%s976_s22 + $0xf8] sm:$0xff]  ;;  %v268_v1 = vld [vmem:[%s976_s22 + $0xf0] sm:$0xff]  ;;  %s534_s17 = sshll.u32 %s972_s27, 5  ;;  %s542_s28 = sshll.u32 %s815_s12, 8 }
  0x40   : > { %v267_v2 = vld [vmem:[%s976_s22 + $0xe8] sm:$0xff]  ;;  %302 = vmatprep.subr.mxu0 %v269_v0  ;;  %543 = vmatprep.subr.mxu1 %v269_v0  ;;  %v266_v3 = vld [vmem:[%s976_s22 + $0xe0] sm:$0xff]  ;;  %v265_v4 = vld [vmem:[%s976_s22 + $0xd8] sm:$0xff]  ;;  %s215_s19 = scalar_lea.vmem [#allocation8], %s534_s17  ;;  %s1053_s26 = scalar_lea.hbm %s1102_s2, %s542_s28 }
  0x41   : > { %303 = vmatpush1.xpose.msra.mxu0 %v268_v1  ;;  %575 = vmatpush1.xpose.msra.mxu1 %v268_v1  ;;  %v264_v5 = vld [vmem:[%s976_s22 + $0xd0] sm:$0xff]  ;;  %v263_v6 = vld [vmem:[%s976_s22 + $0xc8] sm:$0xff]  ;;  %v262_v7 = vld [vmem:[%s976_s22 + $0xc0] sm:$0xff]  ;;  %s415_s21 = sshll.u32 %s215_s19, 4  ;;  %s399_s29 = scalar_lea.sflag [#allocation5], %s972_s27  ;;  %s1048_s21 = int_to_ptr.vmem [resolvable:$true] %s415_s21 }
  0x42   : > { %304 = vmatprep.subr.mxu0 %v267_v2  ;;  %544 = vmatprep.subr.mxu1 %v267_v2  ;;  %v261_v8 = vld [vmem:[%s976_s22 + $0xb8] sm:$0xff]  ;;  %v260_v9 = vld [vmem:[%s976_s22 + $0xb0] sm:$0xff]  ;;  %v259_v10 = vld [vmem:[%s976_s22 + $0xa8] sm:$0xff]  ;;  %s739_s12 = scalar_lea.vmem %s1048_s21, 512  ;;  %p1115_p4 = scmp.ne.s32.totalorder %s1112_s5, 0 }
  0x43   : > { %v258_v11 = vld [vmem:[%s976_s22 + $0xa0] sm:$0xff]  ;;  %v257_v12 = vld [vmem:[%s976_s22 + $0x98] sm:$0xff]  ;;  %v235_v13 = vld [vmem:[#allocation3 + $0x8] sm:$0xff]  ;;  %p740_p1 = scmp.ne.s32.totalorder %s1048_s21, %s739_s12  ;;  %s829_s18 = smov [#allocation8]  }
  0x44   : > { %v237_v14 = vld [vmem:[#allocation3 + $0x18] sm:$0xff]  ;;  %v256_v15 = vld [vmem:[%s976_s22 + $0x90] sm:$0xff]  ;;  %v255_v16 = vld [vmem:[%s976_s22 + $0x88] sm:$0xff]  ;;  %366 = vmatprep.mubr.f32.mxu0 %v235_v13  ;;  %s743_s30 = sshll.u32 %s829_s18, 4  ;;  %s744_s30 = int_to_ptr.vmem [resolvable:$false] %s743_s30 }
  0x45   : > { %305 = vmatpush1.xpose.msra.mxu0 %v266_v3  ;;  %576 = vmatpush1.xpose.msra.mxu1 %v266_v3  ;;  %v254_v17 = vld [vmem:[%s976_s22 + $0x80] sm:$0xff]  ;;  %v253_v18 = vld [vmem:[%s976_s22 + $0x78] sm:$0xff]  ;;  %v252_v19 = vld [vmem:[%s976_s22 + $0x70] sm:$0xff]  ;;  %p741_p8 = pnand %p740_p1, %p1115_p4  ;;  %s745_s6 = scalar_lea.vmem %s744_s30, 1024 }
  0x46   : > { %306 = vmatprep.subr.mxu0 %v265_v4  ;;  %545 = vmatprep.subr.mxu1 %v265_v4  ;;  %v251_v20 = vld [vmem:[%s976_s22 + $0x68] sm:$0xff]  ;;  %v250_v21 = vld [vmem:[%s976_s22 + $0x60] sm:$0xff]  ;;  %v249_v22 = vld [vmem:[%s976_s22 + $0x58] sm:$0xff]  ;;  %p746_p13 = scmp.lt.s32.totalorder %s1048_s21, %s744_s30  ;;  %p747_p0 = scmp.lt.s32.totalorder %s745_s6, %s739_s12 }
  0x47   : > { %372 = vmatprep.mubr.f32.mxu1 %v237_v14  ;;  %v248_v23 = vld [vmem:[%s976_s22 + $0x50] sm:$0xff]  ;;  %v247_v24 = vld [vmem:[%s976_s22 + $0x48] sm:$0xff]  ;;  %v246_v25 = vld [vmem:[%s976_s22 + $0x40] sm:$0xff]  ;;  %p742_p12 = pneg %p741_p8 }
  0x48   : > { %v245_v26 = vld [vmem:[%s976_s22 + $0x38] sm:$0xff]  ;;  %v244_v27 = vld [vmem:[%s976_s22 + $0x30] sm:$0xff]  ;;  %v243_v28 = vld [vmem:[%s976_s22 + $0x28] sm:$0xff]  ;;  %p748_p2 = por %p747_p0, %p746_p13 }
  0x49   : > { %307 = vmatpush1.xpose.msra.mxu0 %v264_v5  ;;  %577 = vmatpush1.xpose.msra.mxu1 %v264_v5  ;;  %v242_v29 = vld [vmem:[%s976_s22 + $0x20] sm:$0xff]  ;;  %v241_v30 = vld [vmem:[%s976_s22 + $0x18] sm:$0xff]  ;;  %v240_v31 = vld [vmem:[%s976_s22 + $0x10] sm:$0xff] }
  0x4a   : > { %308 = vmatprep.subr.mxu0 %v263_v6  ;;  %546 = vmatprep.subr.mxu1 %v263_v6  ;;  %v239_v32 = vld [vmem:[%s976_s22 + $0x8] sm:$0xff]  ;;  %v238_v33 = vld [vmem:[%s976_s22] sm:$0xff]  ;;  %v301_v34 = vld [vmem:[%s976_s22 + $0x1f8] sm:$0xff]  ;;  %p749_p3 = pnand %p748_p2, %p742_p12 }
  0x4b   : > { %v300_v35 = vld [vmem:[%s976_s22 + $0x1f0] sm:$0xff]  ;;  %v299_v36 = vld [vmem:[%s976_s22 + $0x1e8] sm:$0xff]  ;;  %v298_v37 = vld [vmem:[%s976_s22 + $0x1e0] sm:$0xff] }
  0x4c   : > { %v297_v38 = vld [vmem:[%s976_s22 + $0x1d8] sm:$0xff]  ;;  %v296_v39 = vld [vmem:[%s976_s22 + $0x1d0] sm:$0xff]  ;;  %v295_v40 = vld [vmem:[%s976_s22 + $0x1c8] sm:$0xff] }
  0x4d   : > { %309 = vmatpush1.xpose.msra.mxu0 %v262_v7  ;;  %578 = vmatpush1.xpose.msra.mxu1 %v262_v7  ;;  %v294_v41 = vld [vmem:[%s976_s22 + $0x1c0] sm:$0xff]  ;;  %v293_v42 = vld [vmem:[%s976_s22 + $0x1b8] sm:$0xff]  ;;  %v292_v43 = vld [vmem:[%s976_s22 + $0x1b0] sm:$0xff] }
  0x4e   : > { %310 = vmatprep.subr.mxu0 %v261_v8  ;;  %547 = vmatprep.subr.mxu1 %v261_v8  ;;  %v291_v44 = vld [vmem:[%s976_s22 + $0x1a8] sm:$0xff]  ;;  %v290_v45 = vld [vmem:[%s976_s22 + $0x1a0] sm:$0xff]  ;;  %v289_v46 = vld [vmem:[%s976_s22 + $0x198] sm:$0xff] }
  0x4f   : > { %v288_v47 = vld [vmem:[%s976_s22 + $0x190] sm:$0xff]  ;;  %v287_v48 = vld [vmem:[%s976_s22 + $0x188] sm:$0xff]  ;;  %v286_v49 = vld [vmem:[%s976_s22 + $0x180] sm:$0xff] }
  0x50   : > { %v285_v50 = vld [vmem:[%s976_s22 + $0x178] sm:$0xff]  ;;  %v284_v51 = vld [vmem:[%s976_s22 + $0x170] sm:$0xff]  ;;  %v283_v52 = vld [vmem:[%s976_s22 + $0x168] sm:$0xff] }
  0x51   : > { %311 = vmatpush1.xpose.msra.mxu0 %v260_v9  ;;  %579 = vmatpush1.xpose.msra.mxu1 %v260_v9  ;;  %v282_v53 = vld [vmem:[%s976_s22 + $0x160] sm:$0xff]  ;;  %v281_v54 = vld [vmem:[%s976_s22 + $0x158] sm:$0xff]  ;;  %v280_v55 = vld [vmem:[%s976_s22 + $0x150] sm:$0xff] }
  0x52   : > { %312 = vmatprep.subr.mxu0 %v259_v10  ;;  %548 = vmatprep.subr.mxu1 %v259_v10  ;;  %v279_v56 = vld [vmem:[%s976_s22 + $0x148] sm:$0xff]  ;;  %v278_v57 = vld [vmem:[%s976_s22 + $0x140] sm:$0xff]  ;;  %v277_v58 = vld [vmem:[%s976_s22 + $0x138] sm:$0xff] }
  0x53   : > { %v276_v59 = vld [vmem:[%s976_s22 + $0x130] sm:$0xff]  ;;  %v275_v60 = vld [vmem:[%s976_s22 + $0x128] sm:$0xff]  ;;  %v274_v61 = vld [vmem:[%s976_s22 + $0x120] sm:$0xff] }
  0x54   : > { %v273_v62 = vld [vmem:[%s976_s22 + $0x118] sm:$0xff]  ;;  %v272_v63 = vld [vmem:[%s976_s22 + $0x110] sm:$0xff]  ;;  %v271_v0 = vld [vmem:[%s976_s22 + $0x108] sm:$0xff] }
  0x55   : > { %313 = vmatpush1.xpose.msra.mxu0 %v258_v11  ;;  %580 = vmatpush1.xpose.msra.mxu1 %v258_v11  ;;  %v270_v1 = vld [vmem:[%s976_s22 + $0x100] sm:$0xff]  ;;  %v236_v3 = vld [vmem:[#allocation3 + $0x10] sm:$0xff] }
  0x56   : > { %314 = vmatprep.subr.mxu0 %v257_v12  ;;  %549 = vmatprep.subr.mxu1 %v257_v12  ;;  %v234_v2 = vld [vmem:[#allocation3] sm:$0xff] }
  0x59   : > { %315 = vmatpush1.xpose.msra.mxu0 %v256_v15  ;;  %581 = vmatpush1.xpose.msra.mxu1 %v256_v15 }
  0x5a   : > { %316 = vmatprep.subr.mxu0 %v255_v16  ;;  %550 = vmatprep.subr.mxu1 %v255_v16 }
  0x5d   : > { %317 = vmatpush1.xpose.msra.mxu0 %v254_v17  ;;  %582 = vmatpush1.xpose.msra.mxu1 %v254_v17 }
  0x5e   : > { %318 = vmatprep.subr.mxu0 %v253_v18  ;;  %551 = vmatprep.subr.mxu1 %v253_v18 }
  0x61   : > { %319 = vmatpush1.xpose.msra.mxu0 %v252_v19  ;;  %583 = vmatpush1.xpose.msra.mxu1 %v252_v19 }
  0x62   : > { %320 = vmatprep.subr.mxu0 %v251_v20  ;;  %552 = vmatprep.subr.mxu1 %v251_v20 }
  0x65   : > { %321 = vmatpush1.xpose.msra.mxu0 %v250_v21  ;;  %584 = vmatpush1.xpose.msra.mxu1 %v250_v21 }
  0x66   : > { %322 = vmatprep.subr.mxu0 %v249_v22  ;;  %553 = vmatprep.subr.mxu1 %v249_v22 }
  0x69   : > { %323 = vmatpush1.xpose.msra.mxu0 %v248_v23  ;;  %585 = vmatpush1.xpose.msra.mxu1 %v248_v23 }
  0x6a   : > { %324 = vmatprep.subr.mxu0 %v247_v24  ;;  %554 = vmatprep.subr.mxu1 %v247_v24 }
  0x6d   : > { %325 = vmatpush1.xpose.msra.mxu0 %v246_v25  ;;  %586 = vmatpush1.xpose.msra.mxu1 %v246_v25 }
  0x6e   : > { %326 = vmatprep.subr.mxu0 %v245_v26  ;;  %555 = vmatprep.subr.mxu1 %v245_v26 }
  0x71   : > { %327 = vmatpush1.xpose.msra.mxu0 %v244_v27  ;;  %587 = vmatpush1.xpose.msra.mxu1 %v244_v27 }
  0x72   : > { %328 = vmatprep.subr.mxu0 %v243_v28  ;;  %556 = vmatprep.subr.mxu1 %v243_v28 }
  0x75   : > { %329 = vmatpush1.xpose.msra.mxu0 %v242_v29  ;;  %588 = vmatpush1.xpose.msra.mxu1 %v242_v29 }
  0x76   : > { %330 = vmatprep.subr.mxu0 %v241_v30  ;;  %557 = vmatprep.subr.mxu1 %v241_v30 }
  0x79   : > { %331 = vmatpush1.xpose.msra.mxu0 %v240_v31  ;;  %589 = vmatpush1.xpose.msra.mxu1 %v240_v31 }
  0x7a   : > { %332 = vmatprep.subr.mxu0 %v239_v32  ;;  %558 = vmatprep.subr.mxu1 %v239_v32 }
  0x7d   : > { %333 = vmatpush1.xpose.msra.mxu0 %v238_v33  ;;  %590 = vmatpush1.xpose.msra.mxu1 %v238_v33 }
  0x7e   : > { %334 = vmatprep.subr.mxu0 %v301_v34  ;;  %559 = vmatprep.subr.mxu1 %v301_v34 }
  0x81   : > { %335 = vmatpush2.xpose.msra.mxu0 %v300_v35  ;;  %591 = vmatpush2.xpose.msra.mxu1 %v300_v35 }
  0x82   : > { %336 = vmatprep.subr.mxu0 %v299_v36  ;;  %560 = vmatprep.subr.mxu1 %v299_v36 }
  0x85   : > { %337 = vmatpush2.xpose.msra.mxu0 %v298_v37  ;;  %592 = vmatpush2.xpose.msra.mxu1 %v298_v37 }
  0x86   : > { %338 = vmatprep.subr.mxu0 %v297_v38  ;;  %561 = vmatprep.subr.mxu1 %v297_v38 }
  0x89   : > { %339 = vmatpush2.xpose.msra.mxu0 %v296_v39  ;;  %593 = vmatpush2.xpose.msra.mxu1 %v296_v39 }
  0x8a   : > { %340 = vmatprep.subr.mxu0 %v295_v40  ;;  %562 = vmatprep.subr.mxu1 %v295_v40 }
  0x8d   : > { %341 = vmatpush2.xpose.msra.mxu0 %v294_v41  ;;  %594 = vmatpush2.xpose.msra.mxu1 %v294_v41 }
  0x8e   : > { %342 = vmatprep.subr.mxu0 %v293_v42  ;;  %563 = vmatprep.subr.mxu1 %v293_v42 }
  0x91   : > { %343 = vmatpush2.xpose.msra.mxu0 %v292_v43  ;;  %595 = vmatpush2.xpose.msra.mxu1 %v292_v43 }
  0x92   : > { %344 = vmatprep.subr.mxu0 %v291_v44  ;;  %564 = vmatprep.subr.mxu1 %v291_v44 }
  0x95   : > { %345 = vmatpush2.xpose.msra.mxu0 %v290_v45  ;;  %596 = vmatpush2.xpose.msra.mxu1 %v290_v45 }
  0x96   : > { %346 = vmatprep.subr.mxu0 %v289_v46  ;;  %565 = vmatprep.subr.mxu1 %v289_v46 }
  0x99   : > { %347 = vmatpush2.xpose.msra.mxu0 %v288_v47  ;;  %597 = vmatpush2.xpose.msra.mxu1 %v288_v47 }
  0x9a   : > { %348 = vmatprep.subr.mxu0 %v287_v48  ;;  %566 = vmatprep.subr.mxu1 %v287_v48 }
  0x9d   : > { %349 = vmatpush2.xpose.msra.mxu0 %v286_v49  ;;  %598 = vmatpush2.xpose.msra.mxu1 %v286_v49 }
  0x9e   : > { %350 = vmatprep.subr.mxu0 %v285_v50  ;;  %567 = vmatprep.subr.mxu1 %v285_v50 }
  0xa1   : > { %351 = vmatpush2.xpose.msra.mxu0 %v284_v51  ;;  %599 = vmatpush2.xpose.msra.mxu1 %v284_v51 }
  0xa2   : > { %352 = vmatprep.subr.mxu0 %v283_v52  ;;  %568 = vmatprep.subr.mxu1 %v283_v52 }
  0xa5   : > { %353 = vmatpush2.xpose.msra.mxu0 %v282_v53  ;;  %600 = vmatpush2.xpose.msra.mxu1 %v282_v53 }
  0xa6   : > { %354 = vmatprep.subr.mxu0 %v281_v54  ;;  %569 = vmatprep.subr.mxu1 %v281_v54 }
  0xa9   : > { %355 = vmatpush2.xpose.msra.mxu0 %v280_v55  ;;  %601 = vmatpush2.xpose.msra.mxu1 %v280_v55 }
  0xaa   : > { %356 = vmatprep.subr.mxu0 %v279_v56  ;;  %570 = vmatprep.subr.mxu1 %v279_v56 }
  0xad   : > { %357 = vmatpush2.xpose.msra.mxu0 %v278_v57  ;;  %602 = vmatpush2.xpose.msra.mxu1 %v278_v57 }
  0xae   : > { %358 = vmatprep.subr.mxu0 %v277_v58  ;;  %571 = vmatprep.subr.mxu1 %v277_v58 }
  0xb1   : > { %359 = vmatpush2.xpose.msra.mxu0 %v276_v59  ;;  %603 = vmatpush2.xpose.msra.mxu1 %v276_v59 }
  0xb2   : > { %360 = vmatprep.subr.mxu0 %v275_v60  ;;  %572 = vmatprep.subr.mxu1 %v275_v60 }
  0xb5   : > { %361 = vmatpush2.xpose.msra.mxu0 %v274_v61  ;;  %604 = vmatpush2.xpose.msra.mxu1 %v274_v61 }
  0xb6   : > { %362 = vmatprep.subr.mxu0 %v273_v62  ;;  %573 = vmatprep.subr.mxu1 %v273_v62 }
  0xb9   : > { %363 = vmatpush2.xpose.msra.mxu0 %v272_v63  ;;  %605 = vmatpush2.xpose.msra.mxu1 %v272_v63 }
  0xba   : > { %364 = vmatprep.subr.mxu0 %v271_v0  ;;  %574 = vmatprep.subr.mxu1 %v271_v0 }
  0xbd   : > { %365 = vmatpush2.xpose.msra.mxu0 %v270_v1  ;;  %606 = vmatpush2.xpose.msra.mxu1 %v270_v1 }
  0xc0   : > { %367 = vmatmul.mubr.f32.vlgmr.msra.gmra.mxu0 %v234_v2  ;;  %373 = vmatmul.mubr.f32.vlgmr.msra.gmra.mxu1 %v236_v3 }
 0x180   : > { %v368_v4 = vpop.f32.mrf.mxu0  ;;  %v374_v5 = vpop.f32.mrf.mxu1 }
 0x181   : > { %394 = vst [vmem:[%s215_s19] sm:$0xff] %v368_v4  ;;  %396 = vst [vmem:[%s215_s19 + $0x10] sm:$0xff] %v374_v5 }
 0x182   : > { %v370_v6 = vpop.f32.mrf.mxu0  ;;  %v376_v7 = vpop.f32.mrf.mxu1 }
 0x183   : > { %395 = vst [vmem:[%s215_s19 + $0x8] sm:$0xff] %v370_v6  ;;  %397 = vst [vmem:[%s215_s19 + $0x18] sm:$0xff] %v376_v7 }
 0x184   : > { %752 = shalt.err (!%p749_p3)
}
 0x185   : > { %s753_s3 = scalar_lea.hbm %s1053_s26, 512  ;;  %s757_s7 = scalar_lea.hbm %s1102_s2, 1536 }
 0x186   : > { %p754_p5 = scmp.ne.s32.totalorder %s1053_s26, %s753_s3  ;;  %p758_p9 = scmp.lt.s32.totalorder %s1053_s26, %s1102_s2 }
 0x187   : > { %p759_p11 = scmp.lt.s32.totalorder %s757_s7, %s753_s3 }
 0x188   : > { %p755_p7 = pnand %p754_p5, %p1115_p4 }
 0x189   : > { %p760_p10 = por %p759_p11, %p758_p9 }
 0x18a   : > { %p756_p6 = pneg %p755_p7 }
 0x18c   : > { %p761_p1 = pnand %p760_p10, %p756_p6 }
 0x18e   : > { %764 = shalt.err (!%p761_p1)
}
 0x18f   : > { %s830_s17 = smov 256   ;;  %s831_s19 = smov 768  }
 0x190   : > { %s832_s28 = smov 16  }
 0x191   : > { %613 = dma.vmem_to_hbm [thread:$0]  (%p1115_p4), %s1048_s21, 512, %s1053_s26, %s399_s29, %s830_s17, %s831_s19, %s832_s28  }
 0x192 PF: > { %p630_p8 = scmp.ge.s32.totalorder %s823_s14, 2  ;;  %s430_s23 = sand.u32 1, %s803_s9  }
 0x193   : > { %p1116_p12 = scmp.ne.s32.totalorder %s1108_s20, 0  ;;  %s431_s24 = scalar_lea.sflag [#allocation5], %s430_s23 }
 0x195   : > { %p624_p13 = pnand %p630_p8, %p1116_p12 }
 0x197   : > { %p625_p0 = pneg %p624_p13 }
 0x199   : > { %798 = dma.done.wait (%p625_p0), %s431_s24, 512  }
 0x19a   : > { %800 = vsyncadd (%p625_p0), %s431_s24, 4294966784  ;;  %s19_s14 = sadd.s32 1, %s823_s14   ;;  %s1117_s9 = smov %s807_s10 }
 0x19b   : > { %p16_p2 = scmp.ge.s32.totalorder %s19_s14, 5   ;;  %s1118_s10 = smov %s811_s11 }
 0x19c   : > { %s1119_s11 = smov %s946_s15  ;;  %s1120_s12 = smov %s819_s13 }
 0x19d   : > { %s1121_s13 = smov %s1123_s25  ;;  %18 = sbr.rel (!%p16_p2) target bundleno = 7 (0x7), region = 87 }
 0x1a2   :  { %436 = vsyncpa [#allocation4], 1 }
 0x1a3   :  { %438 = vsyncpa [#allocation4 + $0x1], 1 }
 0x1a4   :  { %439 = vsyncpa [#allocation7], 1 }
 0x1a5   :  { %441 = vsyncpa [#allocation7 + $0x1], 1 }
 0x1a6   :  { %442 = vsyncpa [#allocation5], 1 }
 0x1a7   :  { %444 = vsyncpa [#allocation5 + $0x1], 1 }

</bundles_post_ra>
